<compile_context>
chip_gen: v6e
topology: v6e:2x2x1
jax: 0.10.0
libtpu: 0.0.40
codegen_flags: <defaults>
</compile_context>

<pallas_src>
import functools

import jax
import jax.numpy as jnp
from jax import lax
from jax.experimental import pallas as pl
from jax.experimental.pallas import tpu as pltpu

_EPS = 1e-9
_LANE = 128
_SUBLANE = 8


def _round_up(x, m):
    return ((x + m - 1) // m) * m


def _cdiv(a, b):
    return -(-a // b)


def _tpu_vmem_capacity():
    try:
        return int(pltpu.get_tpu_info().vmem_capacity_bytes)
    except Exception:
        return 128 << 20  # v5e/v6e physical VMEM


def _default_num_splits(vmem_cap):
    # v7x-like chips (64 MiB VMEM per TC) have 2 TensorCores -> split the batch.
    # v5e/v6e (128 MiB, 1 TC): a split is just a serial loop, keep 1.
    return 2 if vmem_cap <= (96 << 20) else 1


def _hps_loss_kernel(x_ref, t_ref, pt_ref, pn_ref, loss_ref, acc_ref, *,
                     true_b, tiles_per_split):
    split = pl.program_id(0)   # "parallel" axis (TensorCore split on 2-TC chips)
    step = pl.program_id(1)    # "arbitrary" reduction axis over batch tiles

    @pl.when(step == 0)
    def _init():
        acc_ref[...] = jnp.zeros_like(acc_ref)

    x = x_ref[...]                                   # [TB, D] native dtype
    t = t_ref[...]                                   # [TB, 1] int32
    tb = x.shape[0]
    c = pt_ref.shape[1]

    # S[r, k] = <x_r, prototype_k> : MXU, native-dtype operands, f32 accumulate.
    s = jnp.dot(x, pt_ref[...], preferred_element_type=jnp.float32)    # [TB, C]

    # Row selection via one-hot over the (small) class axis — no [TB, D] gather.
    col = lax.broadcasted_iota(jnp.int32, (tb, c), 1)
    onehot = (col == t).astype(jnp.float32)                             # [TB, C]

    dot = jnp.sum(onehot * s, axis=-1, keepdims=True)                   # [TB, 1]
    sp = jnp.sum(onehot * pn_ref[...], axis=-1, keepdims=True)          # [TB, 1]

    xf = x.astype(jnp.float32)
    sx = jnp.sum(xf * xf, axis=-1, keepdims=True)                       # [TB, 1]

    # 1 / (max(||x||, eps) * max(||p||, eps)) with a single rsqrt (EUP slot).
    eps2 = jnp.float32(_EPS * _EPS)
    inv = lax.rsqrt(jnp.maximum(sx, eps2) * jnp.maximum(sp, eps2))
    dist = (1.0 - dot * inv) ** 2                                       # [TB, 1]

    # Mask rows past the true batch size. Edge blocks read unspecified data
    # beyond the array; jnp.where drops any NaN/Inf from the unselected branch.
    row = lax.broadcasted_iota(jnp.int32, (tb, 1), 0)
    base = (split * tiles_per_split + step) * tb
    dist = jnp.where(base + row < true_b, dist, 0.0)

    # Per-row VMEM accumulator (pure VPU add; no per-step scalar RMW / XLU sum).
    acc_ref[...] += dist

    @pl.when(step == pl.num_programs(1) - 1)
    def _finalize():
        total = jnp.sum(acc_ref[...])
        r = lax.broadcasted_iota(jnp.int32, loss_ref.shape, 0)
        k = lax.broadcasted_iota(jnp.int32, loss_ref.shape, 1)
        loss_ref[...] = jnp.where((r == 0) & (k == 0), total, 0.0)


def hps_loss(output, prototypes, target, *, tile_b=None, num_splits=None):
    """output: [B, D], prototypes: [C, D], target: [B] int labels -> scalar f32."""
    output = jnp.asarray(output)
    prototypes = jnp.asarray(prototypes)
    target = jnp.asarray(target)

    B, D = output.shape
    C, D2 = prototypes.shape
    assert D2 == D, "prototype feature dim must match output feature dim"

    vmem_cap = _tpu_vmem_capacity()
    if num_splits is None:
        num_splits = _default_num_splits(vmem_cap)
    num_splits = max(1, int(num_splits))

    x_itemsize = output.dtype.itemsize
    p_itemsize = prototypes.dtype.itemsize

    # ---- tile sizing from a VMEM byte budget (not a fixed row count) --------
    if tile_b is None:
        tile_b = (4 << 20) // max(1, D * x_itemsize)   # ~4 MiB of x per tile
    rows_per_split = _cdiv(B, num_splits)
    cap_rows = _round_up(rows_per_split, _SUBLANE)
    tile_b = min(max(int(tile_b), _SUBLANE), 1024, cap_rows)
    tile_b = max(_SUBLANE, (tile_b // _SUBLANE) * _SUBLANE)

    c_pad = _round_up(C, _LANE)
    d_pad = _round_up(D, _SUBLANE)

    def _vmem_need(tb):
        x_b = 2 * tb * D * x_itemsize              # double-buffered input tile
        xf_b = tb * D * 4                          # f32 copy for ||x||^2
        s_b = tb * c_pad * 4                       # scores S
        oh_b = tb * c_pad * 4                      # one-hot
        t_b = 2 * tb * _LANE * 4                   # target tile (lane padded)
        acc_b = tb * _LANE * 4                     # accumulator scratch
        pt_b = 2 * d_pad * c_pad * p_itemsize      # resident prototypes^T
        pn_b = 2 * _SUBLANE * _LANE * 4            # per-class squared norms
        out_b = 2 * _SUBLANE * _LANE * 4
        return x_b + xf_b + s_b + oh_b + t_b + acc_b + pt_b + pn_b + out_b + (2 << 20)

    # Generation-aware ceiling: ~64 MiB on 128-MiB-VMEM chips (v5e/v6e),
    # ~32 MiB on 64-MiB-VMEM chips (v7x).  Never clamp below the actual need.
    ceiling = min(vmem_cap // 2, 64 << 20)
    while _vmem_need(tile_b) > ceiling and tile_b > _SUBLANE:
        tile_b = max(_SUBLANE, ((tile_b // 2) // _SUBLANE) * _SUBLANE)

    tiles_total = _cdiv(B, tile_b)
    tiles_per_split = _cdiv(tiles_total, num_splits)
    num_splits = _cdiv(tiles_total, tiles_per_split)   # drop fully-empty splits

    need = _vmem_need(tile_b)
    vmem_limit = int(max(min(2 * need, ceiling), need + (1 << 20)))

    # Small wrapper-side precomputation (C*D only; the [B, D] tensor is never
    # padded or copied outside the kernel).
    protos_t = prototypes.T                                               # [D, C]
    proto_sqnorm = jnp.sum(
        jnp.square(prototypes.astype(jnp.float32)), axis=-1).reshape(1, C)
    target2d = target.astype(jnp.int32).reshape(B, 1)

    def _row_block(split_idx, step_idx):
        # Clamp so every block is at least partially in bounds; the in-kernel
        # mask uses the *unclamped* base, so clamped (fully-OOB) blocks add 0.
        blk = jnp.minimum(split_idx * tiles_per_split + step_idx, tiles_total - 1)
        return (blk, 0)

    out_rows = num_splits * _SUBLANE

    cost = pl.CostEstimate(
        flops=2 * B * C * D + 8 * B,
        transcendentals=B,
        bytes_accessed=(B * D * x_itemsize + C * D * p_itemsize + B * 4
                        + out_rows * _LANE * 4),
    )

    partials = pl.pallas_call(
        functools.partial(_hps_loss_kernel, true_b=B,
                          tiles_per_split=tiles_per_split),
        out_shape=jax.ShapeDtypeStruct((out_rows, _LANE), jnp.float32),
        grid=(num_splits, tiles_per_split),
        in_specs=[
            pl.BlockSpec((tile_b, D), _row_block),           # output rows
            pl.BlockSpec((tile_b, 1), _row_block),           # target rows
            pl.BlockSpec((D, C), lambda s, i: (0, 0)),       # prototypes^T (resident)
            pl.BlockSpec((1, C), lambda s, i: (0, 0)),       # per-class ||p||^2
        ],
        out_specs=pl.BlockSpec((_SUBLANE, _LANE), lambda s, i: (s, 0)),
        scratch_shapes=[pltpu.VMEM((tile_b, 1), jnp.float32)],
        compiler_params=pltpu.CompilerParams(
            dimension_semantics=("parallel", "arbitrary"),
            vmem_limit_bytes=vmem_limit,
        ),
        cost_estimate=cost,
    )(output, target2d, protos_t, proto_sqnorm)

    return jnp.sum(partials)


def _reference(output, prototypes, target):
    p = jnp.take(prototypes, target, axis=0)
    dot = jnp.sum(output * p, axis=-1)
    nx = jnp.maximum(jnp.linalg.norm(output, axis=-1), _EPS)
    np_ = jnp.maximum(jnp.linalg.norm(p, axis=-1), _EPS)
    cos = dot / (nx * np_)
    return jnp.sum((1.0 - cos) ** 2)


if __name__ == "__main__":
    key = jax.random.PRNGKey(0)

    # Test 1: batch not a multiple of the tile/sublane -> exercises the
    # no-pad edge block + in-kernel row mask.
    k1, k2, k3 = jax.random.split(key, 3)
    B, D, C = 13, 32, 4
    output = jax.random.normal(k1, (B, D), dtype=jnp.float32)
    prototypes = jax.random.normal(k2, (C, D), dtype=jnp.float32)
    target = jax.random.randint(k3, (B,), 0, C, dtype=jnp.int32)

    loss = jax.block_until_ready(hps_loss(output, prototypes, target))
    ref = _reference(output, prototypes, target)
    assert jnp.allclose(loss, ref, rtol=1e-5, atol=1e-5), (loss, ref)

    # Test 2: multiple tiles per split -> exercises the resident accumulator.
    k4, k5, k6 = jax.random.split(jax.random.PRNGKey(1), 3)
    B2, D2, C2 = 40, 128, 5
    output2 = jax.random.normal(k4, (B2, D2), dtype=jnp.float32)
    prototypes2 = jax.random.normal(k5, (C2, D2), dtype=jnp.float32)
    target2 = jax.random.randint(k6, (B2,), 0, C2, dtype=jnp.int32)

    loss2 = jax.block_until_ready(hps_loss(output2, prototypes2, target2, tile_b=8))
    ref2 = _reference(output2, prototypes2, target2)
    assert jnp.allclose(loss2, ref2, rtol=1e-5, atol=1e-5), (loss2, ref2)

    # Test 3: forced 2-way TensorCore split + ragged batch + multiple tiles ->
    # exercises clamped (fully-masked) edge blocks and per-split finalize.
    k7, k8, k9 = jax.random.split(jax.random.PRNGKey(2), 3)
    B3, D3, C3 = 21, 32, 4
    output3 = jax.random.normal(k7, (B3, D3), dtype=jnp.float32)
    prototypes3 = jax.random.normal(k8, (C3, D3), dtype=jnp.float32)
    target3 = jax.random.randint(k9, (B3,), 0, C3, dtype=jnp.int32)

    loss3 = jax.block_until_ready(
        hps_loss(output3, prototypes3, target3, tile_b=8, num_splits=2))
    ref3 = _reference(output3, prototypes3, target3)
    assert jnp.allclose(loss3, ref3, rtol=1e-5, atol=1e-5), (loss3, ref3)

    print("KERNEL_OK")
</pallas_src>

<mosaic_0001>
module attributes {stable_mosaic.version = 11 : i64} {
  func.func @_hps_loss_kernel(%arg0: i32, %arg1: i32, %arg2: memref<16x32xf32, #tpu.memory_space<vmem>>, %arg3: memref<16x1xi32, #tpu.memory_space<vmem>>, %arg4: memref<32x4xf32, #tpu.memory_space<vmem>>, %arg5: memref<1x4xf32, #tpu.memory_space<vmem>>, %arg6: memref<8x128xf32, #tpu.memory_space<vmem>>, %arg7: memref<16x1xf32, #tpu.memory_space<vmem>>) attributes {dimension_semantics = [#tpu.dimension_semantics<parallel>, #tpu.dimension_semantics<arbitrary>], iteration_bounds = array<i64: 1, 1>, scalar_prefetch = 0 : i64, scratch_operands = 1 : i64, tpu.core_type = #tpu.core_type<tc>, window_params = [{transform_indices = @transform_0, window_bounds = array<i64: 16, 32>}, {transform_indices = @transform_1, window_bounds = array<i64: 16, 1>}, {pipeline_mode = #tpu.pipeline_mode<synchronous>, transform_indices = @transform_2, window_bounds = array<i64: 32, 4>}, {pipeline_mode = #tpu.pipeline_mode<synchronous>, transform_indices = @transform_3, window_bounds = array<i64: 1, 4>}, {transform_indices = @transform_4, window_bounds = array<i64: 8, 128>}]} {
    %c0_i32 = arith.constant 0 : i32
    %0 = arith.cmpi eq, %arg1, %c0_i32 : i32
    %1 = arith.extui %0 : i1 to i32
    %c0_i32_0 = arith.constant 0 : i32
    %2 = arith.cmpi ne, %1, %c0_i32_0 : i32
    scf.if %2 {
      %cst_21 = arith.constant 0.000000e+00 : f32
      %49 = vector.broadcast %cst_21 : f32 to vector<16x1xf32>
      %c0_22 = arith.constant 0 : index
      %c0_23 = arith.constant 0 : index
      %50 = vector.load %arg7[%c0_22, %c0_23] : memref<16x1xf32, #tpu.memory_space<vmem>>, vector<16x1xf32>
      tpu.vector_store %arg7[%c0_22, %c0_23], %49 {strides = array<i32>} : memref<16x1xf32, #tpu.memory_space<vmem>>, vector<16x1xf32>,
    } else {
    }
    %c0 = arith.constant 0 : index
    %c0_1 = arith.constant 0 : index
    %3 = vector.load %arg2[%c0, %c0_1] : memref<16x32xf32, #tpu.memory_space<vmem>>, vector<16x32xf32>
    %c0_2 = arith.constant 0 : index
    %c0_3 = arith.constant 0 : index
    %4 = vector.load %arg3[%c0_2, %c0_3] : memref<16x1xi32, #tpu.memory_space<vmem>>, vector<16x1xi32>
    %c0_4 = arith.constant 0 : index
    %c0_5 = arith.constant 0 : index
    %5 = vector.load %arg4[%c0_4, %c0_5] : memref<32x4xf32, #tpu.memory_space<vmem>>, vector<32x4xf32>
    %cst = arith.constant dense<0.000000e+00> : vector<16x4xf32>
    %6 = tpu.matmul %3, %5, %cst {dimension_numbers = #tpu.dot_dimension_numbers<[1], [0], [0], [1], [0, 0, 1, 1], [], []>} : vector<16x32xf32>, vector<32x4xf32>, vector<16x4xf32> -> vector<16x4xf32>
    %7 = tpu.iota {dimensions = array<i32: 1>} : vector<16x4xi32>
    %8 = vector.broadcast %4 : vector<16x1xi32> to vector<16x4xi32>
    %9 = arith.cmpi eq, %7, %8 : vector<16x4xi32>
    %10 = arith.extui %9 : vector<16x4xi1> to vector<16x4xi32>
    %11 = arith.sitofp %10 : vector<16x4xi32> to vector<16x4xf32>
    %12 = arith.mulf %11, %6 : vector<16x4xf32>
    %cst_6 = arith.constant dense<0.000000e+00> : vector<16xf32>
    %13 = vector.multi_reduction <add>, %12, %cst_6 [1] : vector<16x4xf32> to vector<16xf32>
    %14 = vector.shape_cast %13 : vector<16xf32> to vector<16x1xf32>
    %c0_7 = arith.constant 0 : index
    %c0_8 = arith.constant 0 : index
    %15 = vector.load %arg5[%c0_7, %c0_8] : memref<1x4xf32, #tpu.memory_space<vmem>>, vector<1x4xf32>
    %16 = vector.broadcast %15 : vector<1x4xf32> to vector<16x4xf32>
    %17 = arith.mulf %11, %16 : vector<16x4xf32>
    %cst_9 = arith.constant dense<0.000000e+00> : vector<16xf32>
    %18 = vector.multi_reduction <add>, %17, %cst_9 [1] : vector<16x4xf32> to vector<16xf32>
    %19 = vector.shape_cast %18 : vector<16xf32> to vector<16x1xf32>
    %20 = arith.mulf %3, %3 : vector<16x32xf32>
    %cst_10 = arith.constant dense<0.000000e+00> : vector<16xf32>
    %21 = vector.multi_reduction <add>, %20, %cst_10 [1] : vector<16x32xf32> to vector<16xf32>
    %22 = vector.shape_cast %21 : vector<16xf32> to vector<16x1xf32>
    %cst_11 = arith.constant 1.000000e-18 : f32
    %23 = vector.broadcast %cst_11 : f32 to vector<16x1xf32>
    %24 = arith.maximumf %22, %23 : vector<16x1xf32>
    %cst_12 = arith.constant 1.000000e-18 : f32
    %25 = vector.broadcast %cst_12 : f32 to vector<16x1xf32>
    %26 = arith.maximumf %19, %25 : vector<16x1xf32>
    %27 = arith.mulf %24, %26 : vector<16x1xf32>
    %28 = math.rsqrt %27 : vector<16x1xf32>
    %29 = arith.mulf %14, %28 : vector<16x1xf32>
    %cst_13 = arith.constant 1.000000e+00 : f32
    %30 = vector.broadcast %cst_13 : f32 to vector<16x1xf32>
    %31 = arith.subf %30, %29 : vector<16x1xf32>
    %32 = arith.mulf %31, %31 : vector<16x1xf32>
    %33 = tpu.iota {dimensions = array<i32: 0>} : vector<16x1xi32>
    %c1_i32 = arith.constant 1 : i32
    %34 = arith.muli %arg0, %c1_i32 : i32
    %35 = arith.addi %34, %arg1 : i32
    %c16_i32 = arith.constant 16 : i32
    %36 = arith.muli %35, %c16_i32 : i32
    %37 = vector.broadcast %36 : i32 to vector<16x1xi32>
    %38 = arith.addi %37, %33 : vector<16x1xi32>
    %c13_i32 = arith.constant 13 : i32
    %39 = vector.broadcast %c13_i32 : i32 to vector<16x1xi32>
    %40 = arith.cmpi slt, %38, %39 : vector<16x1xi32>
    %cst_14 = arith.constant 0.000000e+00 : f32
    %41 = vector.broadcast %cst_14 : f32 to vector<16x1xf32>
    %42 = arith.select %40, %32, %41 : vector<16x1xi1>, vector<16x1xf32>
    %c0_15 = arith.constant 0 : index
    %c0_16 = arith.constant 0 : index
    %43 = vector.load %arg7[%c0_15, %c0_16] : memref<16x1xf32, #tpu.memory_space<vmem>>, vector<16x1xf32>
    %44 = arith.addf %43, %42 : vector<16x1xf32>
    %c0_17 = arith.constant 0 : index
    %c0_18 = arith.constant 0 : index
    %45 = vector.load %arg7[%c0_17, %c0_18] : memref<16x1xf32, #tpu.memory_space<vmem>>, vector<16x1xf32>
    tpu.vector_store %arg7[%c0_17, %c0_18], %44 {strides = array<i32>} : memref<16x1xf32, #tpu.memory_space<vmem>>, vector<16x1xf32>,
    %c0_i32_19 = arith.constant 0 : i32
    %46 = arith.cmpi eq, %arg1, %c0_i32_19 : i32
    %47 = arith.extui %46 : i1 to i32
    %c0_i32_20 = arith.constant 0 : i32
    %48 = arith.cmpi ne, %47, %c0_i32_20 : i32
    scf.if %48 {
      %c0_21 = arith.constant 0 : index
      %c0_22 = arith.constant 0 : index
      %49 = vector.load %arg7[%c0_21, %c0_22] : memref<16x1xf32, #tpu.memory_space<vmem>>, vector<16x1xf32>
      %50 = vector.shape_cast %49 : vector<16x1xf32> to vector<1x16x1xf32>
      %cst_23 = arith.constant dense<0.000000e+00> : vector<1xf32>
      %51 = vector.multi_reduction <add>, %50, %cst_23 [1, 2] : vector<1x16x1xf32> to vector<1xf32>
      %52 = vector.shape_cast %51 : vector<1xf32> to vector<1x1x1xf32>
      %53 = vector.extract %52[0, 0, 0] : f32 from vector<1x1x1xf32>
      %54 = tpu.iota {dimensions = array<i32: 0>} : vector<8x128xi32>
      %55 = tpu.iota {dimensions = array<i32: 1>} : vector<8x128xi32>
      %c0_i32_24 = arith.constant 0 : i32
      %56 = vector.broadcast %c0_i32_24 : i32 to vector<8x128xi32>
      %57 = arith.cmpi eq, %54, %56 : vector<8x128xi32>
      %c0_i32_25 = arith.constant 0 : i32
      %58 = vector.broadcast %c0_i32_25 : i32 to vector<8x128xi32>
      %59 = arith.cmpi eq, %55, %58 : vector<8x128xi32>
      %60 = arith.andi %57, %59 : vector<8x128xi1>
      %cst_26 = arith.constant 0.000000e+00 : f32
      %61 = vector.broadcast %53 : f32 to vector<8x128xf32>
      %62 = vector.broadcast %cst_26 : f32 to vector<8x128xf32>
      %63 = arith.select %60, %61, %62 : vector<8x128xi1>, vector<8x128xf32>
      %c0_27 = arith.constant 0 : index
      %c0_28 = arith.constant 0 : index
      %64 = vector.load %arg6[%c0_27, %c0_28] : memref<8x128xf32, #tpu.memory_space<vmem>>, vector<8x128xf32>
      tpu.vector_store %arg6[%c0_27, %c0_28], %63 {strides = array<i32>} : memref<8x128xf32, #tpu.memory_space<vmem>>, vector<8x128xf32>,
    } else {
    }
    return
  }
  func.func @transform_0(%arg0: i32, %arg1: i32) -> (i32, i32) {
    %c1_i32 = arith.constant 1 : i32
    %0 = arith.muli %arg0, %c1_i32 : i32
    %1 = arith.addi %0, %arg1 : i32
    %c0_i32 = arith.constant 0 : i32
    %2 = arith.minsi %1, %c0_i32 : i32
    %c0_i32_0 = arith.constant 0 : i32
    %c0_i32_1 = arith.constant 0 : i32
    return %2, %c0_i32_0 : i32, i32
  }
  func.func @transform_1(%arg0: i32, %arg1: i32) -> (i32, i32) {
    %c1_i32 = arith.constant 1 : i32
    %0 = arith.muli %arg0, %c1_i32 : i32
    %1 = arith.addi %0, %arg1 : i32
    %c0_i32 = arith.constant 0 : i32
    %2 = arith.minsi %1, %c0_i32 : i32
    %c0_i32_0 = arith.constant 0 : i32
    %c0_i32_1 = arith.constant 0 : i32
    return %2, %c0_i32_0 : i32, i32
  }
  func.func @transform_2(%arg0: i32, %arg1: i32) -> (i32, i32) {
    %c0_i32 = arith.constant 0 : i32
    %c0_i32_0 = arith.constant 0 : i32
    %c0_i32_1 = arith.constant 0 : i32
    return %c0_i32, %c0_i32_0 : i32, i32
  }
  func.func @transform_3(%arg0: i32, %arg1: i32) -> (i32, i32) {
    %c0_i32 = arith.constant 0 : i32
    %c0_i32_0 = arith.constant 0 : i32
    %c0_i32_1 = arith.constant 0 : i32
    return %c0_i32, %c0_i32_0 : i32, i32
  }
  func.func @transform_4(%arg0: i32, %arg1: i32) -> (i32, i32) {
    %c0_i32 = arith.constant 0 : i32
    %c0_i32_0 = arith.constant 0 : i32
    return %arg0, %c0_i32 : i32, i32
  }
}

</mosaic_0001>

<bundles_post_ra>
// kernel: tpu_custom_call.1
= control target key start
LH: loop header
LB: loop body
LE: loop exit
PB: predicated region body
PF: predicated region fallthrough
CT: control target
= control target key end

     0   :  { %vm97_vm0 = vcmask 261120   ;;  %vm86_vm1 = vcmask 7168   ;;  %v361_v4 = vmov 0   ;;  %v362_v8 = vmov 0.0   ;;  %s438_s0 = inlined_call_operand.vmem [shape: f32[13,32], index: 0, kind: input, shape index: {}]   ;;  %s439_s1 = inlined_call_operand.vmem [shape: s32[13,1], index: 1, kind: input, shape index: {}]   ;;  %s440_s2 = inlined_call_operand.vmem [shape: f32[32,4], index: 2, kind: input, shape index: {}]   ;;  %s441_s3 = inlined_call_operand.vmem [shape: f32[1,4], index: 3, kind: input, shape index: {}]   ;;  %s442_s4 = inlined_call_operand.hbm [shape: f32[8,128], index: 4, kind: output, shape index: {}]  }
   0x1   :  { %v96_v0 = vld [vmem:[%s440_s2 + $0x18] sm:$0xff]  ;;  %v95_v1 = vld [vmem:[%s440_s2 + $0x10] sm:$0xff]  ;;  %v89_v2 = vld [vmem:[%s438_s0] sm:$0xff]  ;;  %334 = vset.pattern.permute.xlu0 %v361_v4  ;;  %87 = vst.msk [vmem:[#allocation2] sm:$0xff] %vm86_vm1, %v362_v8 }
   0x2   :  { %318 = vmatprep.subr.mxu0 %v96_v0  ;;  %v90_v3 = vld [vmem:[%s438_s0 + $0x8] sm:$0xff]  ;;  %326 = vmatprep.mubr.msk.f32.mxu0 %vm97_vm0, %v89_v2  ;;  %v217_v6 = vmul.f32 %v89_v2, %v89_v2  ;;  %88 = vst.msk [vmem:[#allocation2 + $0x8] sm:$0xff] %vm86_vm1, %v362_v8 }
   0x3   :  { %319 = vmatpush3.msra.mxu0 %v96_v0  ;;  %v94_v5 = vld [vmem:[%s440_s2 + $0x8] sm:$0xff]  ;;  %v218_v9 = vmul.f32 %v90_v3, %v90_v3 }
   0x4   :  { %v92_v7 = vld [vmem:[%s439_s1 + $0x8] sm:$0xff] }
   0x5   :  { %9 = vsyncpa [#allocation4], 0  ;;  %320 = vmatprep.subr.mxu0 %v95_v1  ;;  %185 = vperm.xlu0 %334, %v92_v7   ;;  %v93_v10 = vld [vmem:[%s440_s2] sm:$0xff]  ;;  %v222_v12 = vsel %vm97_vm0, %v218_v9, 0.0  ;;  %v219_v13 = vsel %vm97_vm0, %v217_v6, 0.0  ;;  %v179_v14 = vlaneseq  ;;  %vm195_vm3 = vcmask 31744  }
   0x6   :  { %321 = vmatpush3.msra.mxu0 %v95_v1  ;;  %v91_v11 = vld [vmem:[%s439_s1] sm:$0xff]  ;;  %223 = vadd.xlane.f32.xlu1 %v222_v12  ;;  %s363_s1 = smov [#allocation3]  }
   0x7   :  { %322 = vmatprep.subr.mxu0 %v94_v5  ;;  %v419_v15 = vand.u32 127, %v179_v14  ;;  %v311_v17 = vld [vmem:[%s441_s3] ss:$0 sm:$0xff]  ;;  %v240_v41 = vshrl.u32 %v179_v14, 7  ;;  %s287_s3 = sshll.u32 %s363_s1, 4  ;;  %s288_s3 = int_to_ptr.vmem [resolvable:$true] %s287_s3 }
   0x8   :  { %323 = vmatpush3.msra.mxu0 %v94_v5  ;;  %v251_v55 = vld [vmem:[#allocation2] sm:$0xff]  ;;  %s339_s6 = scalar_lea.vmem %s288_s3, 128  ;;  %p344_p1 = scmp.lt.s32.totalorder %s288_s3, %s288_s3 }
   0x9   :  { %324 = vmatprep.subr.mxu0 %v93_v10  ;;  %182 = vperm.xlu0 %334, %v91_v11   ;;  %v241_v43 = vadd.s32 8, %v240_v41  ;;  %v252_v50 = vld [vmem:[#allocation2 + $0x8] sm:$0xff]  ;;  %vm275_vm6 = vcmp.eq.s32.totalorder %v240_v41, 0  ;;  %vm276_vm7 = vcmp.eq.s32.totalorder %v419_v15, 0  ;;  %p340_p0 = scmp.ne.s32.totalorder %s288_s3, %s339_s6  ;;  %p345_p2 = scmp.lt.s32.totalorder %s339_s6, %s339_s6 }
   0xa   :  { %325 = vmatpush3.msra.mxu0 %v93_v10  ;;  %vm277_vm8 = vmand %vm275_vm6, %vm276_vm7 }
   0xb   :  { %327 = vmatmul.mubr.msk.f32.vlgmr.msra.gmra.mxu0 %vm97_vm0, %v90_v3  ;;  %vm248_vm5 = vcmp.lt.s32.totalorder %v241_v43, 13  ;;  %p346_p3 = por %p345_p2, %p344_p1 }
   0xd   :  { %p347_p4 = pnand %p346_p3, %p340_p0 }
  0x80   :  { %v186_v16 = vpop.permute.xlu0 %185 }
  0x81   :  { %vm188_vm2 = vcmp.eq.s32.totalorder %v419_v15, %v186_v16 }
  0x82   :  { %v310_v18 = vsel %vm188_vm2, 1.0, %v362_v8 }
  0x83   :  { %v210_v19 = vmul.f32 %v311_v17, %v310_v18 }
  0x84   :  { %v183_v20 = vpop.permute.xlu0 %182 }
  0x85   :  { %vm187_vm4 = vcmp.eq.s32.totalorder %v419_v15, %v183_v20  ;;  %v214_v21 = vsel %vm195_vm3, %v210_v19, 0.0 }
  0x86   :  { %v309_v22 = vsel %vm187_vm4, 1.0, %v362_v8  ;;  %215 = vadd.xlane.f32.xlu1 %v214_v21 }
  0x87   :  { %v209_v23 = vmul.f32 %v311_v17, %v309_v22 }
  0x89   :  { %v211_v24 = vsel %vm195_vm3, %v209_v23, 0.0 }
  0x8a   :  { %220 = vadd.xlane.f32.xlu1 %v219_v13  ;;  %212 = vadd.xlane.f32.xlu0 %v211_v24 }
  0x8f   :  { %v224_v31 = vpop.xlane.xlu1 %223 }
  0x90   :  { %v226_v33 = vmax.f32 %v224_v31, 1e-18 }
  0xcb   :  { %v328_v25 = vpop.f32.mrf.mxu0 }
  0xcc   :  { %v194_v26 = vmul.f32 %v328_v25, %v310_v18 }
  0xcd   :  { %v170_v27 = vpop.f32.mrf.mxu0 }
  0xce   :  { %v193_v28 = vmul.f32 %v309_v22, %v170_v27  ;;  %v199_v29 = vsel %vm195_vm3, %v194_v26, 0.0 }
  0xcf   :  { %200 = vadd.xlane.f32.xlu1 %v199_v29 }
  0xd0   :  { %v196_v30 = vsel %vm195_vm3, %v193_v28, 0.0 }
  0xd3   :  { %197 = vadd.xlane.f32.xlu1 %v196_v30 }
 0x10f   :  { %v216_v32 = vpop.xlane.xlu1 %215 }
 0x110   :  { %v228_v34 = vmax.f32 %v216_v32, 1e-18 }
 0x112   :  { %v230_v37 = vmul.f32 %v228_v34, %v226_v33 }
 0x113   :  { %v221_v35 = vpop.xlane.xlu1 %220  ;;  %v213_v36 = vpop.xlane.xlu0 %212 }
 0x114   :  { %v225_v38 = vmax.f32 %v221_v35, 1e-18  ;;  %v227_v39 = vmax.f32 %v213_v36, 1e-18  ;;  %335 = vrsqrt.f32 %v230_v37 }
 0x116   :  { %v229_v40 = vmul.f32 %v227_v39, %v225_v38 }
 0x118   :  { %337 = vrsqrt.f32 %v229_v40 }
 0x121   :  { %v336_v42 = vpop.eup %335 }
 0x125   :  { %v338_v47 = vpop.eup %337 }
 0x158   :  { %v201_v44 = vpop.xlane.xlu1 %200 }
 0x159   :  { %v234_v45 = vmul.f32 %v336_v42, %v201_v44 }
 0x15b   :  { %v236_v46 = vsub.f32 1.0, %v234_v45 }
 0x15c   :  { %v198_v48 = vpop.xlane.xlu1 %197 }
 0x15d   :  { %v238_v49 = vmul.f32 %v236_v46, %v236_v46  ;;  %v233_v51 = vmul.f32 %v338_v47, %v198_v48 }
 0x15f   :  { %v250_v52 = vsel %vm248_vm5, %v238_v49, 0.0  ;;  %v235_v53 = vsub.f32 1.0, %v233_v51 }
 0x160   :  { %v254_v54 = vadd.f32 %v252_v50, %v250_v52 }
 0x161   :  { %v237_v56 = vmul.f32 %v235_v53, %v235_v53 }
 0x162   :  { %257 = vst.msk [vmem:[#allocation2 + $0x8] sm:$0xff] %vm86_vm1, %v254_v54 }
 0x163   :  { %v253_v57 = vadd.f32 %v251_v55, %v237_v56 }
 0x165   :  { %256 = vst.msk [vmem:[#allocation2] sm:$0xff] %vm86_vm1, %v253_v57 }
 0x169   :  { %v262_v58 = vld [vmem:[#allocation2 + $0x8] sm:$0xff] }
 0x16a   :  { %v264_v61 = vsel %vm86_vm1, %v262_v58, 0.0 }
 0x16c   :  { %v261_v59 = vld [vmem:[#allocation2] sm:$0xff] }
 0x16d   :  { %v263_v60 = vsel %vm86_vm1, %v261_v59, 0.0 }
 0x16e   :  { %v265_v62 = vadd.f32 %v264_v61, %v263_v60 }
 0x170   :  { %266 = vadd.xlane.f32.xlu1 %v265_v62 }
 0x1f9   :  { %v267_v63 = vpop.xlane.xlu1 %266 }
 0x1fa   :  { %v268_v0 = vrot.slane %v267_v63, 4 }
 0x1fc   :  { %v269_v1 = vadd.f32 %v268_v0, %v267_v63 }
 0x1fe   :  { %v270_v2 = vrot.slane %v269_v1, 2 }
 0x200   :  { %v271_v3 = vadd.f32 %v270_v2, %v269_v1 }
 0x202   :  { %v272_v4 = vrot.slane %v271_v3, 1 }
 0x204   :  { %v273_v5 = vadd.f32 %v272_v4, %v271_v3 }
 0x206   :  { %329 = vpush %v273_v5 }
 0x237   :  { %s330_s5 = spop %329 }
 0x238   :  { %v278_v6 = vstv %s330_s5 }
 0x239   :  { %v279_v7 = vsel %vm277_vm8, %v278_v6, 0.0 }
 0x23a   :  { %280 = vst [vmem:[#allocation3] sm:$0xff] %v279_v7 }
 0x23b   :  { %350 = shalt.err (!%p347_p4)
}
 0x23c   :  { %290 = dma.vmem_to_hbm [thread:$0]  %s288_s3, 128, %s442_s4, [#allocation4]  }
 0x23d   :  { %359 = dma.done.wait [#allocation4], 128  }
 0x23e   :  { %360 = vsyncadd [#allocation4], 4294967168 }
 0x23f   :  { %294 = vsyncpa [#allocation4], 1 }

</bundles_post_ra>
